<compile_context>
chip_gen: v5e
topology: v5e:2x2
jax: 0.10.0
libtpu: 0.0.40
codegen_flags: <defaults>
</compile_context>

<pallas_src>
import jax
import jax.numpy as jnp
from jax.experimental import pallas as pl
from jax.experimental.pallas import tpu as pltpu

ZSIZE = 32


def _round_up(n, m):
    return ((n + m - 1) // m) * m


def discriminator_kernel(cw_ref, cb_ref, b4_ref,          # SMEM scalars
                         x0_ref, x1_ref,                  # (TB, 32) VMEM tiles
                         w1_ref, b1_ref, w2_ref, b2_ref,  # resident VMEM weights
                         w3_ref, b3_ref, w4_ref,
                         o_ref):                          # (TB, 1) output tile
    # Conv1d(2, 1, kernel_size=1): per-position weighted sum over 2 channels,
    # with scalar weights/bias read from SMEM (free on the scalar path).
    h = x0_ref[...] * cw_ref[0] + x1_ref[...] * cw_ref[1] + cb_ref[0]
    h = jnp.maximum(h, 0.0)

    # fc1 -> relu  (TB,32) @ (32,128)
    h = jnp.dot(h, w1_ref[...], preferred_element_type=jnp.float32) + b1_ref[...]
    h = jnp.maximum(h, 0.0)
    # fc2 -> relu  (TB,128) @ (128,256)
    h = jnp.dot(h, w2_ref[...], preferred_element_type=jnp.float32) + b2_ref[...]
    h = jnp.maximum(h, 0.0)
    # fc3 -> relu  (TB,256) @ (256,128)
    h = jnp.dot(h, w3_ref[...], preferred_element_type=jnp.float32) + b3_ref[...]
    h = jnp.maximum(h, 0.0)

    # fc4 (128 -> 1): VPU multiply + lane reduction instead of an N=1 MXU pass.
    logits = jnp.sum(h * w4_ref[...], axis=-1, keepdims=True) + b4_ref[0]
    o_ref[...] = jax.nn.sigmoid(logits)                   # (TB, 1)


def discriminator_forward(x, params, *, tb=512):
    """x: (B, 2, ZSIZE) float32. Returns (B, 1, 1) float32, matching PyTorch.

    params = (cw, cb, w1, b1, w2, b2, w3, b3, w4_row, b4) with
      cw: (2,)  cb: (1,)                        Conv1d(2,1,1) weight/bias
      w1: (32,128)  b1: (1,128)                 fc1 (weight pre-transposed to (in,out))
      w2: (128,256) b2: (1,256)                 fc2
      w3: (256,128) b3: (1,128)                 fc3
      w4_row: (1,128)  b4: (1,)                 fc4 (weight kept as a row)
    """
    cw, cb, w1, b1, w2, b2, w3, b3, w4_row, b4 = params
    B = x.shape[0]
    L = x.shape[2]

    # Batch tile: multiple of 8 sublanes, capped so a tile's activations
    # ((TB,256) f32) + double-buffered inputs stay tiny vs. VMEM on all chips.
    tb = min(tb, _round_up(B, 8))
    B_pad = _round_up(B, tb)

    # Channel-split input: two (B, 32) slabs instead of (B, 2, 32) blocks.
    x0 = x[:, 0, :]
    x1 = x[:, 1, :]
    if B_pad != B:
        pad = ((0, B_pad - B), (0, 0))
        x0 = jnp.pad(x0, pad)
        x1 = jnp.pad(x1, pad)

    grid = (B_pad // tb,)
    smem = pltpu.MemorySpace.SMEM
    resident = lambda i: (0, 0)   # weights/biases: same block every grid step

    out = pl.pallas_call(
        discriminator_kernel,
        out_shape=jax.ShapeDtypeStruct((B_pad, 1), jnp.float32),
        grid=grid,
        in_specs=[
            pl.BlockSpec(memory_space=smem),               # cw (2,)
            pl.BlockSpec(memory_space=smem),               # cb (1,)
            pl.BlockSpec(memory_space=smem),               # b4 (1,)
            pl.BlockSpec((tb, L), lambda i: (i, 0)),       # x0 tile
            pl.BlockSpec((tb, L), lambda i: (i, 0)),       # x1 tile
            pl.BlockSpec(w1.shape, resident),              # w1 (32,128)
            pl.BlockSpec(b1.shape, resident),              # b1 (1,128)
            pl.BlockSpec(w2.shape, resident),              # w2 (128,256)
            pl.BlockSpec(b2.shape, resident),              # b2 (1,256)
            pl.BlockSpec(w3.shape, resident),              # w3 (256,128)
            pl.BlockSpec(b3.shape, resident),              # b3 (1,128)
            pl.BlockSpec(w4_row.shape, resident),          # w4 row (1,128)
        ],
        out_specs=pl.BlockSpec((tb, 1), lambda i: (i, 0)),
        compiler_params=pltpu.CompilerParams(
            dimension_semantics=("parallel",)),
    )(cw, cb, b4, x0, x1, w1, b1, w2, b2, w3, b3, w4_row)

    return out[:B].reshape(B, 1, 1)


def _reference_forward(x, params):
    # Pure-JAX reference for correctness check.
    cw, cb, w1, b1, w2, b2, w3, b3, w4_row, b4 = params
    h = x[:, 0, :] * cw[0] + x[:, 1, :] * cw[1] + cb[0]
    h = jnp.maximum(h, 0.0)
    h = jnp.maximum(h @ w1 + b1, 0.0)
    h = jnp.maximum(h @ w2 + b2, 0.0)
    h = jnp.maximum(h @ w3 + b3, 0.0)
    return jax.nn.sigmoid(h @ w4_row.T + b4).reshape(x.shape[0], 1, 1)


if __name__ == "__main__":
    key = jax.random.PRNGKey(0)
    keys = jax.random.split(key, 12)
    B = 8

    # Deterministic input: (B, 2 channels, zsize=32), PyTorch NCL layout.
    x = jax.random.normal(keys[0], (B, 2, ZSIZE), jnp.float32)

    # Deterministic PyTorch-style uniform(-1/sqrt(fan_in), 1/sqrt(fan_in)) init.
    def u(k, shape, fan_in):
        bound = 1.0 / float(fan_in) ** 0.5
        return jax.random.uniform(k, shape, jnp.float32, -bound, bound)

    cw = u(keys[1], (2,), 2)              # Conv1d(2,1,1) weight (k dim squeezed)
    cb = u(keys[2], (1,), 2)              # Conv1d bias
    w1 = u(keys[3], (ZSIZE, 128), ZSIZE)  # fc1 weight, transposed to (in, out)
    b1 = u(keys[4], (1, 128), ZSIZE)
    w2 = u(keys[5], (128, 256), 128)
    b2 = u(keys[6], (1, 256), 128)
    w3 = u(keys[7], (256, 128), 256)
    b3 = u(keys[8], (1, 128), 256)
    w4 = u(keys[9], (1, 128), 128)        # fc4 weight kept as a (1, 128) row
    b4 = u(keys[10], (1,), 128)
    params = (cw, cb, w1, b1, w2, b2, w3, b3, w4, b4)

    y = discriminator_forward(x, params)
    jax.block_until_ready(y)

    y_ref = _reference_forward(x, params)
    assert y.shape == (B, 1, 1)
    assert jnp.allclose(y, y_ref, atol=1e-5, rtol=1e-5)

    print("KERNEL_OK")
</pallas_src>

<mosaic_0001>
module attributes {stable_mosaic.version = 11 : i64} {
  func.func @discriminator_kernel(%arg0: i32, %arg1: memref<2xf32, #tpu.memory_space<smem>>, %arg2: memref<1xf32, #tpu.memory_space<smem>>, %arg3: memref<1xf32, #tpu.memory_space<smem>>, %arg4: memref<8x32xf32, #tpu.memory_space<vmem>>, %arg5: memref<8x32xf32, #tpu.memory_space<vmem>>, %arg6: memref<32x128xf32, #tpu.memory_space<vmem>>, %arg7: memref<1x128xf32, #tpu.memory_space<vmem>>, %arg8: memref<128x256xf32, #tpu.memory_space<vmem>>, %arg9: memref<1x256xf32, #tpu.memory_space<vmem>>, %arg10: memref<256x128xf32, #tpu.memory_space<vmem>>, %arg11: memref<1x128xf32, #tpu.memory_space<vmem>>, %arg12: memref<1x128xf32, #tpu.memory_space<vmem>>, %arg13: memref<8x1xf32, #tpu.memory_space<vmem>>) attributes {dimension_semantics = [#tpu.dimension_semantics<parallel>], iteration_bounds = array<i64: 1>, scalar_prefetch = 0 : i64, scratch_operands = 0 : i64, tpu.core_type = #tpu.core_type<tc>, window_params = [{transform_indices = @transform_0, window_bounds = array<i64: 2>}, {transform_indices = @transform_1, window_bounds = array<i64: 1>}, {transform_indices = @transform_2, window_bounds = array<i64: 1>}, {transform_indices = @transform_3, window_bounds = array<i64: 8, 32>}, {transform_indices = @transform_4, window_bounds = array<i64: 8, 32>}, {pipeline_mode = #tpu.pipeline_mode<synchronous>, transform_indices = @transform_5, window_bounds = array<i64: 32, 128>}, {pipeline_mode = #tpu.pipeline_mode<synchronous>, transform_indices = @transform_6, window_bounds = array<i64: 1, 128>}, {pipeline_mode = #tpu.pipeline_mode<synchronous>, transform_indices = @transform_7, window_bounds = array<i64: 128, 256>}, {pipeline_mode = #tpu.pipeline_mode<synchronous>, transform_indices = @transform_8, window_bounds = array<i64: 1, 256>}, {pipeline_mode = #tpu.pipeline_mode<synchronous>, transform_indices = @transform_9, window_bounds = array<i64: 256, 128>}, {pipeline_mode = #tpu.pipeline_mode<synchronous>, transform_indices = @transform_10, window_bounds = array<i64: 1, 128>}, {pipeline_mode = #tpu.pipeline_mode<synchronous>, transform_indices = @transform_11, window_bounds = array<i64: 1, 128>}, {transform_indices = @transform_12, window_bounds = array<i64: 8, 1>}]} {
    %c0 = arith.constant 0 : index
    %c0_0 = arith.constant 0 : index
    %0 = vector.load %arg4[%c0, %c0_0] : memref<8x32xf32, #tpu.memory_space<vmem>>, vector<8x32xf32>
    %c0_1 = arith.constant 0 : index
    %1 = memref.load %arg1[%c0_1] : memref<2xf32, #tpu.memory_space<smem>>
    %2 = vector.broadcast %1 : f32 to vector<8x32xf32>
    %3 = arith.mulf %0, %2 : vector<8x32xf32>
    %c0_2 = arith.constant 0 : index
    %c0_3 = arith.constant 0 : index
    %4 = vector.load %arg5[%c0_2, %c0_3] : memref<8x32xf32, #tpu.memory_space<vmem>>, vector<8x32xf32>
    %c1 = arith.constant 1 : index
    %5 = memref.load %arg1[%c1] : memref<2xf32, #tpu.memory_space<smem>>
    %6 = vector.broadcast %5 : f32 to vector<8x32xf32>
    %7 = arith.mulf %4, %6 : vector<8x32xf32>
    %8 = arith.addf %3, %7 : vector<8x32xf32>
    %c0_4 = arith.constant 0 : index
    %9 = memref.load %arg2[%c0_4] : memref<1xf32, #tpu.memory_space<smem>>
    %10 = vector.broadcast %9 : f32 to vector<8x32xf32>
    %11 = arith.addf %8, %10 : vector<8x32xf32>
    %cst = arith.constant 0.000000e+00 : f32
    %12 = vector.broadcast %cst : f32 to vector<8x32xf32>
    %13 = arith.maximumf %11, %12 : vector<8x32xf32>
    %c0_5 = arith.constant 0 : index
    %c0_6 = arith.constant 0 : index
    %14 = vector.load %arg6[%c0_5, %c0_6] : memref<32x128xf32, #tpu.memory_space<vmem>>, vector<32x128xf32>
    %cst_7 = arith.constant dense<0.000000e+00> : vector<8x128xf32>
    %15 = tpu.matmul %13, %14, %cst_7 {dimension_numbers = #tpu.dot_dimension_numbers<[1], [0], [0], [1], [0, 0, 1, 1], [], []>} : vector<8x32xf32>, vector<32x128xf32>, vector<8x128xf32> -> vector<8x128xf32>
    %c0_8 = arith.constant 0 : index
    %c0_9 = arith.constant 0 : index
    %16 = vector.load %arg7[%c0_8, %c0_9] : memref<1x128xf32, #tpu.memory_space<vmem>>, vector<1x128xf32>
    %17 = vector.broadcast %16 : vector<1x128xf32> to vector<8x128xf32>
    %18 = arith.addf %15, %17 : vector<8x128xf32>
    %cst_10 = arith.constant 0.000000e+00 : f32
    %19 = vector.broadcast %cst_10 : f32 to vector<8x128xf32>
    %20 = arith.maximumf %18, %19 : vector<8x128xf32>
    %c0_11 = arith.constant 0 : index
    %c0_12 = arith.constant 0 : index
    %21 = vector.load %arg8[%c0_11, %c0_12] : memref<128x256xf32, #tpu.memory_space<vmem>>, vector<128x256xf32>
    %cst_13 = arith.constant dense<0.000000e+00> : vector<8x256xf32>
    %22 = tpu.matmul %20, %21, %cst_13 {dimension_numbers = #tpu.dot_dimension_numbers<[1], [0], [0], [1], [0, 0, 1, 1], [], []>} : vector<8x128xf32>, vector<128x256xf32>, vector<8x256xf32> -> vector<8x256xf32>
    %c0_14 = arith.constant 0 : index
    %c0_15 = arith.constant 0 : index
    %23 = vector.load %arg9[%c0_14, %c0_15] : memref<1x256xf32, #tpu.memory_space<vmem>>, vector<1x256xf32>
    %24 = vector.broadcast %23 : vector<1x256xf32> to vector<8x256xf32>
    %25 = arith.addf %22, %24 : vector<8x256xf32>
    %cst_16 = arith.constant 0.000000e+00 : f32
    %26 = vector.broadcast %cst_16 : f32 to vector<8x256xf32>
    %27 = arith.maximumf %25, %26 : vector<8x256xf32>
    %c0_17 = arith.constant 0 : index
    %c0_18 = arith.constant 0 : index
    %28 = vector.load %arg10[%c0_17, %c0_18] : memref<256x128xf32, #tpu.memory_space<vmem>>, vector<256x128xf32>
    %cst_19 = arith.constant dense<0.000000e+00> : vector<8x128xf32>
    %29 = tpu.matmul %27, %28, %cst_19 {dimension_numbers = #tpu.dot_dimension_numbers<[1], [0], [0], [1], [0, 0, 1, 1], [], []>} : vector<8x256xf32>, vector<256x128xf32>, vector<8x128xf32> -> vector<8x128xf32>
    %c0_20 = arith.constant 0 : index
    %c0_21 = arith.constant 0 : index
    %30 = vector.load %arg11[%c0_20, %c0_21] : memref<1x128xf32, #tpu.memory_space<vmem>>, vector<1x128xf32>
    %31 = vector.broadcast %30 : vector<1x128xf32> to vector<8x128xf32>
    %32 = arith.addf %29, %31 : vector<8x128xf32>
    %cst_22 = arith.constant 0.000000e+00 : f32
    %33 = vector.broadcast %cst_22 : f32 to vector<8x128xf32>
    %34 = arith.maximumf %32, %33 : vector<8x128xf32>
    %c0_23 = arith.constant 0 : index
    %c0_24 = arith.constant 0 : index
    %35 = vector.load %arg12[%c0_23, %c0_24] : memref<1x128xf32, #tpu.memory_space<vmem>>, vector<1x128xf32>
    %36 = vector.broadcast %35 : vector<1x128xf32> to vector<8x128xf32>
    %37 = arith.mulf %34, %36 : vector<8x128xf32>
    %cst_25 = arith.constant dense<0.000000e+00> : vector<8xf32>
    %38 = vector.multi_reduction <add>, %37, %cst_25 [1] : vector<8x128xf32> to vector<8xf32>
    %39 = vector.shape_cast %38 : vector<8xf32> to vector<8x1xf32>
    %c0_26 = arith.constant 0 : index
    %40 = memref.load %arg3[%c0_26] : memref<1xf32, #tpu.memory_space<smem>>
    %41 = vector.broadcast %40 : f32 to vector<8x1xf32>
    %42 = arith.addf %39, %41 : vector<8x1xf32>
    %43 = arith.negf %42 : vector<8x1xf32>
    %44 = math.exp %43 : vector<8x1xf32>
    %cst_27 = arith.constant 1.000000e+00 : f32
    %45 = vector.broadcast %cst_27 : f32 to vector<8x1xf32>
    %46 = arith.addf %45, %44 : vector<8x1xf32>
    %47 = arith.divf %45, %46 : vector<8x1xf32>
    %c0_28 = arith.constant 0 : index
    %c0_29 = arith.constant 0 : index
    %48 = vector.load %arg13[%c0_28, %c0_29] : memref<8x1xf32, #tpu.memory_space<vmem>>, vector<8x1xf32>
    tpu.vector_store %arg13[%c0_28, %c0_29], %47 {strides = array<i32>} : memref<8x1xf32, #tpu.memory_space<vmem>>, vector<8x1xf32>,
    return
  }
  func.func @transform_0(%arg0: i32) -> i32 {
    %c0_i32 = arith.constant 0 : i32
    %c0_i32_0 = arith.constant 0 : i32
    return %c0_i32 : i32
  }
  func.func @transform_1(%arg0: i32) -> i32 {
    %c0_i32 = arith.constant 0 : i32
    %c0_i32_0 = arith.constant 0 : i32
    return %c0_i32 : i32
  }
  func.func @transform_2(%arg0: i32) -> i32 {
    %c0_i32 = arith.constant 0 : i32
    %c0_i32_0 = arith.constant 0 : i32
    return %c0_i32 : i32
  }
  func.func @transform_3(%arg0: i32) -> (i32, i32) {
    %c0_i32 = arith.constant 0 : i32
    %c0_i32_0 = arith.constant 0 : i32
    return %arg0, %c0_i32 : i32, i32
  }
  func.func @transform_4(%arg0: i32) -> (i32, i32) {
    %c0_i32 = arith.constant 0 : i32
    %c0_i32_0 = arith.constant 0 : i32
    return %arg0, %c0_i32 : i32, i32
  }
  func.func @transform_5(%arg0: i32) -> (i32, i32) {
    %c0_i32 = arith.constant 0 : i32
    %c0_i32_0 = arith.constant 0 : i32
    %c0_i32_1 = arith.constant 0 : i32
    return %c0_i32, %c0_i32_0 : i32, i32
  }
  func.func @transform_6(%arg0: i32) -> (i32, i32) {
    %c0_i32 = arith.constant 0 : i32
    %c0_i32_0 = arith.constant 0 : i32
    %c0_i32_1 = arith.constant 0 : i32
    return %c0_i32, %c0_i32_0 : i32, i32
  }
  func.func @transform_7(%arg0: i32) -> (i32, i32) {
    %c0_i32 = arith.constant 0 : i32
    %c0_i32_0 = arith.constant 0 : i32
    %c0_i32_1 = arith.constant 0 : i32
    return %c0_i32, %c0_i32_0 : i32, i32
  }
  func.func @transform_8(%arg0: i32) -> (i32, i32) {
    %c0_i32 = arith.constant 0 : i32
    %c0_i32_0 = arith.constant 0 : i32
    %c0_i32_1 = arith.constant 0 : i32
    return %c0_i32, %c0_i32_0 : i32, i32
  }
  func.func @transform_9(%arg0: i32) -> (i32, i32) {
    %c0_i32 = arith.constant 0 : i32
    %c0_i32_0 = arith.constant 0 : i32
    %c0_i32_1 = arith.constant 0 : i32
    return %c0_i32, %c0_i32_0 : i32, i32
  }
  func.func @transform_10(%arg0: i32) -> (i32, i32) {
    %c0_i32 = arith.constant 0 : i32
    %c0_i32_0 = arith.constant 0 : i32
    %c0_i32_1 = arith.constant 0 : i32
    return %c0_i32, %c0_i32_0 : i32, i32
  }
  func.func @transform_11(%arg0: i32) -> (i32, i32) {
    %c0_i32 = arith.constant 0 : i32
    %c0_i32_0 = arith.constant 0 : i32
    %c0_i32_1 = arith.constant 0 : i32
    return %c0_i32, %c0_i32_0 : i32, i32
  }
  func.func @transform_12(%arg0: i32) -> (i32, i32) {
    %c0_i32 = arith.constant 0 : i32
    %c0_i32_0 = arith.constant 0 : i32
    return %arg0, %c0_i32 : i32, i32
  }
}

</mosaic_0001>

<bundles_post_ra>
// kernel: tpu_custom_call.1
= control target key start
LH: loop header
LB: loop body
LE: loop exit
PB: predicated region body
PF: predicated region fallthrough
CT: control target
= control target key end

     0   :  { %19 = vsyncpa [#allocation6], 0  ;;  %s646_s0 = inlined_call_operand.vmem [shape: f32[2], index: 0, kind: input, shape index: {}]   ;;  %s647_s1 = inlined_call_operand.<no memory space> [shape: f32[1], index: 1, kind: input, shape index: {}]   ;;  %s648_s2 = inlined_call_operand.<no memory space> [shape: f32[1], index: 2, kind: input, shape index: {}]   ;;  %s649_s3 = inlined_call_operand.hbm [shape: f32[8,32], index: 3, kind: input, shape index: {}]   ;;  %s650_s4 = inlined_call_operand.hbm [shape: f32[8,32], index: 4, kind: input, shape index: {}]   ;;  %s651_s5 = inlined_call_operand.hbm [shape: f32[32,128], index: 5, kind: input, shape index: {}]   ;;  %s652_s6 = inlined_call_operand.vmem [shape: f32[1,128], index: 6, kind: input, shape index: {}]   ;;  %s653_s7 = inlined_call_operand.hbm [shape: f32[128,256], index: 7, kind: input, shape index: {}]   ;;  %s654_s8 = inlined_call_operand.vmem [shape: f32[1,256], index: 8, kind: input, shape index: {}]   ;;  %s655_s9 = inlined_call_operand.hbm [shape: f32[256,128], index: 9, kind: input, shape index: {}]   ;;  %s656_s10 = inlined_call_operand.vmem [shape: f32[1,128], index: 10, kind: input, shape index: {}]   ;;  %s657_s11 = inlined_call_operand.vmem [shape: f32[1,128], index: 11, kind: input, shape index: {}]   ;;  %s658_s12 = inlined_call_operand.vmem [shape: f32[8,1], index: 12, kind: output, shape index: {}]  }
   0x1   :  { %20 = vsyncpa [#allocation5], 0 }
   0x2   :  { %21 = vsyncpa [#allocation9], 0  ;;  %s52_s23 = sshll.u32 %s650_s4, 4  ;;  %s53_s23 = int_to_ptr.hbm [resolvable:$true] %s52_s23 }
   0x3   :  { %22 = vsyncpa [#allocation12], 0  ;;  %s532_s24 = smov [#allocation8]   ;;  %s77_s28 = sshll.u32 %s653_s7, 4  ;;  %s78_s28 = int_to_ptr.hbm [resolvable:$true] %s77_s28 }
   0x4   :  { %s54_s25 = sshll.u32 %s532_s24, 4  ;;  %s533_s29 = smov [#allocation11]   ;;  %s55_s25 = int_to_ptr.vmem [resolvable:$true] %s54_s25 }
   0x5   :  { %57 = dma.hbm_to_vmem [thread:$0]  %s53_s23, 128, %s55_s25, [#allocation9]  }
   0x6   :  { %s79_s30 = sshll.u32 %s533_s29, 4  ;;  %s534_s13 = smov 256   ;;  %s80_s30 = int_to_ptr.vmem [resolvable:$true] %s79_s30 }
   0x7   :  { %s535_s14 = smov 16   ;;  %s28_s4 = sshll.u32 %s646_s0, 4  ;;  %s29_s4 = int_to_ptr.vmem [resolvable:$true] %s28_s4 }
   0x8   :  { %85 = dma.hbm_to_vmem [thread:$0]  %s78_s28, 4096, %s80_s30, [#allocation12], %s534_s13, %s534_s13, %s535_s14  }
   0x9   :  { %s41_s19 = sshll.u32 %s649_s3, 4  ;;  %s536_s20 = smov [#allocation4]   ;;  %s42_s19 = int_to_ptr.hbm [resolvable:$true] %s41_s19 }
   0xa   :  { %31 = dma.vmem_to_smem %s29_s4, 16, %s536_s20, [#allocation6]  }
   0xb   :  { %s537_s7 = smov [#allocation7]   ;;  %s62_s24 = sshll.u32 %s651_s5, 4  ;;  %s63_s24 = int_to_ptr.hbm [resolvable:$true] %s62_s24 }
   0xc   :  { %s43_s21 = sshll.u32 %s537_s7, 4  ;;  %s538_s25 = smov [#allocation10]   ;;  %s44_s21 = int_to_ptr.vmem [resolvable:$true] %s43_s21 }
   0xd   :  { %46 = dma.hbm_to_vmem [thread:$0]  %s42_s19, 128, %s44_s21, [#allocation5]  }
   0xe   :  { %s64_s26 = sshll.u32 %s538_s25, 4  ;;  %s92_s28 = sshll.u32 %s655_s9, 4  ;;  %s65_s26 = int_to_ptr.vmem [resolvable:$true] %s64_s26  ;;  %s93_s28 = int_to_ptr.hbm [resolvable:$true] %s92_s28 }
   0xf   :  { %s539_s3 = smov 128   ;;  %s540_s29 = smov 8  }
  0x10   :  { %70 = dma.hbm_to_vmem [thread:$0]  %s63_s24, 512, %s65_s26, [#allocation9], %s539_s3, %s539_s3, %s540_s29  }
  0x11   :  { %s541_s30 = smov [#allocation13]  }
  0x12   :  { %s94_s13 = sshll.u32 %s541_s30, 4  ;;  %s95_s13 = int_to_ptr.vmem [resolvable:$true] %s94_s13 }
  0x13   :  { %100 = dma.hbm_to_vmem [thread:$0]  %s93_s28, 4096, %s95_s13, [#allocation12], %s539_s3, %s539_s3, %s540_s29  }
  0x14   :  { %524 = dma.done.wait [#allocation6], 16  }
  0x15   :  { %525 = vsyncadd [#allocation6], 4294967280 }
  0x16   :  { %526 = dma.done.wait [#allocation5], 128  }
  0x17   :  { %527 = vsyncadd [#allocation5], 4294967168 }
  0x18   :  { %528 = dma.done.wait [#allocation9], 640  }
  0x19   :  { %529 = vsyncadd [#allocation9], 4294966656 }
  0x1a   :  { %530 = dma.done.wait [#allocation12], 8192  }
  0x1b   :  { %531 = vsyncadd [#allocation12], 4294959104 }
  0x1c   :  { %129 = sfence }
  0x1d   :  { %v146_v0 = vld [vmem:[#allocation10 + $0x18] sm:$0xff]  ;;  %v145_v1 = vld [vmem:[#allocation10 + $0x10] sm:$0xff]  ;;  %s131_s5 = sld [smem:[#allocation4]]  ;;  %v144_v2 = vld [vmem:[#allocation10 + $0x8] sm:$0xff]  ;;  %v140_v19 = vstv %s647_s1  ;;  %vm151_vm0 = vcmask 261120   ;;  %vm362_vm4 = vcmask 7168  }
  0x1e   :  { %167 = vmatpush.msra.mxu0 %v146_v0  ;;  %s372_s9 = sld [smem:[#allocation4 + $0x1]]  ;;  %v206_v3 = vld [vmem:[#allocation11 + $0xf0] sm:$0xff]  ;;  %v207_v4 = vld [vmem:[#allocation11 + $0xf8] sm:$0xff]  ;;  %v204_v5 = vld [vmem:[#allocation11 + $0xe0] sm:$0xff] }
  0x1f   :  { %214 = vmatpush.msra.mxu1 %v206_v3  ;;  %v205_v6 = vld [vmem:[#allocation11 + $0xe8] sm:$0xff]  ;;  %v143_v7 = vld [vmem:[#allocation10] sm:$0xff]  ;;  %v130_v8 = vld [vmem:[#allocation7] sm:$0xff]  ;;  %234 = vmatpush.msra.mxu2 %v207_v4 }
  0x20   :  { %168 = vmatpush.msra.mxu0 %v145_v1  ;;  %v202_v9 = vld [vmem:[#allocation11 + $0xd0] sm:$0xff]  ;;  %v134_v10 = vld [vmem:[#allocation8] sm:$0xff]  ;;  %v200_v13 = vld [vmem:[#allocation11 + $0xc0] sm:$0xff] }
  0x21   :  { %215 = vmatpush.msra.mxu1 %v204_v5  ;;  %v203_v11 = vld [vmem:[#allocation11 + $0xd8] sm:$0xff]  ;;  %235 = vmatpush.msra.mxu2 %v205_v6  ;;  %v201_v16 = vld [vmem:[#allocation11 + $0xc8] sm:$0xff]  ;;  %v198_v18 = vld [vmem:[#allocation11 + $0xb0] sm:$0xff] }
  0x22   :  { %169 = vmatpush.msra.mxu0 %v144_v2  ;;  %v199_v20 = vld [vmem:[#allocation11 + $0xb8] sm:$0xff]  ;;  %v196_v22 = vld [vmem:[#allocation11 + $0xa0] sm:$0xff]  ;;  %v197_v23 = vld [vmem:[#allocation11 + $0xa8] sm:$0xff] }
  0x23   :  { %v132_v12 = vstv %s131_s5  ;;  %216 = vmatpush.msra.mxu1 %v202_v9  ;;  %236 = vmatpush.msra.mxu2 %v203_v11  ;;  %v194_v25 = vld [vmem:[#allocation11 + $0x90] sm:$0xff]  ;;  %v195_v26 = vld [vmem:[#allocation11 + $0x98] sm:$0xff]  ;;  %v192_v28 = vld [vmem:[#allocation11 + $0x80] sm:$0xff] }
  0x24   :  { %170 = vmatpush.msra.mxu0 %v143_v7  ;;  %v133_v14 = vmul.f32 %v132_v12, %v130_v8  ;;  %v136_v15 = vstv %s372_s9  ;;  %v193_v29 = vld [vmem:[#allocation11 + $0x88] sm:$0xff]  ;;  %v190_v30 = vld [vmem:[#allocation11 + $0x70] sm:$0xff]  ;;  %v191_v31 = vld [vmem:[#allocation11 + $0x78] sm:$0xff] }
  0x25   :  { %v137_v17 = vmul.f32 %v136_v15, %v134_v10  ;;  %217 = vmatpush.msra.mxu1 %v200_v13  ;;  %237 = vmatpush.msra.mxu2 %v201_v16  ;;  %v188_v32 = vld [vmem:[#allocation11 + $0x60] sm:$0xff]  ;;  %v189_v33 = vld [vmem:[#allocation11 + $0x68] sm:$0xff]  ;;  %v186_v34 = vld [vmem:[#allocation11 + $0x50] sm:$0xff] }
  0x26   :  { %v187_v35 = vld [vmem:[#allocation11 + $0x58] sm:$0xff]  ;;  %v184_v36 = vld [vmem:[#allocation11 + $0x40] sm:$0xff]  ;;  %v185_v37 = vld [vmem:[#allocation11 + $0x48] sm:$0xff] }
  0x27   :  { %v138_v21 = vadd.f32 %v137_v17, %v133_v14  ;;  %218 = vmatpush.msra.mxu1 %v198_v18  ;;  %238 = vmatpush.msra.mxu2 %v199_v20  ;;  %v182_v38 = vld [vmem:[#allocation11 + $0x30] sm:$0xff]  ;;  %v183_v39 = vld [vmem:[#allocation11 + $0x38] sm:$0xff]  ;;  %v180_v40 = vld [vmem:[#allocation11 + $0x20] sm:$0xff] }
  0x28   :  { %v181_v41 = vld [vmem:[#allocation11 + $0x28] sm:$0xff]  ;;  %v178_v42 = vld [vmem:[#allocation11 + $0x10] sm:$0xff]  ;;  %v179_v43 = vld [vmem:[#allocation11 + $0x18] sm:$0xff] }
  0x29   :  { %v141_v24 = vadd.f32 %v140_v19, %v138_v21  ;;  %219 = vmatpush.msra.mxu1 %v196_v22  ;;  %239 = vmatpush.msra.mxu2 %v197_v23  ;;  %v176_v44 = vld [vmem:[#allocation11] sm:$0xff]  ;;  %v177_v45 = vld [vmem:[#allocation11 + $0x8] sm:$0xff]  ;;  %v271_v46 = vld [vmem:[#allocation13 + $0x78] sm:$0xff] }
  0x2a   :  { %v270_v47 = vld [vmem:[#allocation13 + $0x70] sm:$0xff]  ;;  %292 = vmatpush.msra.mxu3 %v271_v46  ;;  %v287_v48 = vld [vmem:[#allocation13 + $0xf8] sm:$0xff]  ;;  %v269_v49 = vld [vmem:[#allocation13 + $0x68] sm:$0xff] }
  0x2b   :  { %v142_v27 = vmax.f32 %v141_v24, 0.0  ;;  %220 = vmatpush.msra.mxu1 %v194_v25  ;;  %240 = vmatpush.msra.mxu2 %v195_v26  ;;  %v286_v50 = vld [vmem:[#allocation13 + $0xf0] sm:$0xff]  ;;  %v285_v51 = vld [vmem:[#allocation13 + $0xe8] sm:$0xff]  ;;  %v268_v52 = vld [vmem:[#allocation13 + $0x60] sm:$0xff] }
  0x2c   :  { %312 = vmatpush.msrb.mxu0 %v287_v48  ;;  %293 = vmatpush.msra.mxu3 %v270_v47  ;;  %v284_v53 = vld [vmem:[#allocation13 + $0xe0] sm:$0xff]  ;;  %v267_v54 = vld [vmem:[#allocation13 + $0x58] sm:$0xff]  ;;  %v266_v56 = vld [vmem:[#allocation13 + $0x50] sm:$0xff] }
  0x2d   :  { %373 = vmatmul.msk.f32.vlgmr.msra.gmra.mxu0 %vm151_vm0, %v142_v27  ;;  %221 = vmatpush.msra.mxu1 %v192_v28  ;;  %v283_v55 = vld [vmem:[#allocation13 + $0xd8] sm:$0xff]  ;;  %v282_v57 = vld [vmem:[#allocation13 + $0xd0] sm:$0xff]  ;;  %v265_v58 = vld [vmem:[#allocation13 + $0x48] sm:$0xff] }
  0x2e   :  { %241 = vmatpush.msra.mxu2 %v193_v29  ;;  %313 = vmatpush.msrb.mxu0 %v286_v50  ;;  %v281_v59 = vld [vmem:[#allocation13 + $0xc8] sm:$0xff]  ;;  %v264_v60 = vld [vmem:[#allocation13 + $0x40] sm:$0xff]  ;;  %v263_v62 = vld [vmem:[#allocation13 + $0x38] sm:$0xff] }
  0x2f   :  { %222 = vmatpush.msra.mxu1 %v190_v30  ;;  %294 = vmatpush.msra.mxu3 %v269_v49  ;;  %v280_v61 = vld [vmem:[#allocation13 + $0xc0] sm:$0xff]  ;;  %v279_v63 = vld [vmem:[#allocation13 + $0xb8] sm:$0xff]  ;;  %v262_v0 = vld [vmem:[#allocation13 + $0x30] sm:$0xff] }
  0x30   :  { %242 = vmatpush.msra.mxu2 %v191_v31  ;;  %314 = vmatpush.msrb.mxu0 %v285_v51  ;;  %v278_v1 = vld [vmem:[#allocation13 + $0xb0] sm:$0xff]  ;;  %v261_v2 = vld [vmem:[#allocation13 + $0x28] sm:$0xff]  ;;  %v260_v3 = vld [vmem:[#allocation13 + $0x20] sm:$0xff] }
  0x31   :  { %223 = vmatpush.msra.mxu1 %v188_v32  ;;  %295 = vmatpush.msra.mxu3 %v268_v52  ;;  %v259_v4 = vld [vmem:[#allocation13 + $0x18] sm:$0xff]  ;;  %v385_v5 = vld [vmem:[%s652_s6] ss:$0 sm:$0xff]  ;;  %v277_v10 = vld [vmem:[#allocation13 + $0xa8] sm:$0xff] }
  0x32   :  { %243 = vmatpush.msra.mxu2 %v189_v33  ;;  %315 = vmatpush.msrb.mxu0 %v284_v53  ;;  %v258_v9 = vld [vmem:[#allocation13 + $0x10] sm:$0xff]  ;;  %v257_v11 = vld [vmem:[#allocation13 + $0x8] sm:$0xff]  ;;  %v276_v12 = vld [vmem:[#allocation13 + $0xa0] sm:$0xff] }
  0x33   :  { %224 = vmatpush.msra.mxu1 %v186_v34  ;;  %296 = vmatpush.msra.mxu3 %v267_v54  ;;  %v256_v13 = vld [vmem:[#allocation13] sm:$0xff]  ;;  %v275_v14 = vld [vmem:[#allocation13 + $0x98] sm:$0xff]  ;;  %v274_v15 = vld [vmem:[#allocation13 + $0x90] sm:$0xff] }
  0x34   :  { %244 = vmatpush.msra.mxu2 %v187_v35  ;;  %316 = vmatpush.msrb.mxu0 %v283_v55  ;;  %v273_v16 = vld [vmem:[#allocation13 + $0x88] sm:$0xff]  ;;  %v272_v17 = vld [vmem:[#allocation13 + $0x80] sm:$0xff]  ;;  %v208_v18 = vld [vmem:[%s654_s8] sm:$0x3]  ;;  %v341_v35 = vstv %s648_s2 }
  0x35   :  { %225 = vmatpush.msra.mxu1 %v184_v36  ;;  %297 = vmatpush.msra.mxu3 %v266_v56  ;;  %v210_v19 = vperm.slane %v208_v18, 0  ;;  %v211_v23 = vperm.slane %v208_v18, 1  ;;  %v386_v27 = vld [vmem:[%s656_s10] ss:$0 sm:$0xff] }
  0x36   :  { %245 = vmatpush.msra.mxu2 %v185_v37  ;;  %317 = vmatpush.msrb.mxu0 %v282_v57  ;;  %v387_v32 = vld [vmem:[%s657_s11] ss:$0 sm:$0xff] }
  0x37   :  { %226 = vmatpush.msra.mxu1 %v182_v38  ;;  %298 = vmatpush.msra.mxu3 %v265_v58 }
  0x38   :  { %246 = vmatpush.msra.mxu2 %v183_v39  ;;  %318 = vmatpush.msrb.mxu0 %v281_v59 }
  0x39   :  { %227 = vmatpush.msra.mxu1 %v180_v40  ;;  %299 = vmatpush.msra.mxu3 %v264_v60 }
  0x3a   :  { %247 = vmatpush.msra.mxu2 %v181_v41  ;;  %319 = vmatpush.msrb.mxu0 %v280_v61 }
  0x3b   :  { %228 = vmatpush.msra.mxu1 %v178_v42  ;;  %300 = vmatpush.msra.mxu3 %v263_v62 }
  0x3c   :  { %248 = vmatpush.msra.mxu2 %v179_v43  ;;  %320 = vmatpush.msrb.mxu0 %v279_v63 }
  0x3d   :  { %229 = vmatpush.msra.mxu1 %v176_v44  ;;  %301 = vmatpush.msra.mxu3 %v262_v0 }
  0x3e   :  { %249 = vmatpush.msra.mxu2 %v177_v45  ;;  %321 = vmatpush.msrb.mxu0 %v278_v1 }
  0x3f   :  { %302 = vmatpush.msra.mxu3 %v261_v2 }
  0x40   :  { %322 = vmatpush.msrb.mxu0 %v277_v10 }
  0x41   :  { %303 = vmatpush.msra.mxu3 %v260_v3 }
  0x42   :  { %323 = vmatpush.msrb.mxu0 %v276_v12 }
  0x43   :  { %304 = vmatpush.msra.mxu3 %v259_v4 }
  0x44   :  { %324 = vmatpush.msrb.mxu0 %v275_v14 }
  0x45   :  { %305 = vmatpush.msra.mxu3 %v258_v9 }
  0x46   :  { %325 = vmatpush.msrb.mxu0 %v274_v15 }
  0x47   :  { %306 = vmatpush.msra.mxu3 %v257_v11 }
  0x48   :  { %326 = vmatpush.msrb.mxu0 %v273_v16 }
  0x49   :  { %307 = vmatpush.msra.mxu3 %v256_v13 }
  0x4a   :  { %327 = vmatpush.msrb.mxu0 %v272_v17 }
  0xaa   :  { %v172_v6 = vpop.f32.mrf.mxu0 }
  0xab   :  { %v173_v7 = vadd.f32 %v385_v5, %v172_v6 }
  0xad   :  { %v175_v8 = vmax.f32 %v173_v7, 0.0 }
  0xaf   :  { %230 = vmatmul.f32.vlgmr.msra.gmra.mxu1 %v175_v8  ;;  %250 = vmatmul.f32.vlgmr.msra.gmra.mxu2 %v175_v8 }
 0x12c   :  { %v231_v20 = vpop.f32.mrf.mxu1 }
 0x12d   :  { %v232_v21 = vadd.f32 %v231_v20, %v210_v19 }
 0x12f   :  { %v254_v22 = vmax.f32 %v232_v21, 0.0 }
 0x131   :  { %308 = vmatmul.f32.vlgmr.msra.gmra.mxu3 %v254_v22 }
 0x132   :  { %v251_v24 = vpop.f32.mrf.mxu2 }
 0x133   :  { %v252_v25 = vadd.f32 %v251_v24, %v211_v23 }
 0x135   :  { %v255_v26 = vmax.f32 %v252_v25, 0.0 }
 0x137   :  { %328 = vmatmul.f32.vlgmr.msrb.gmra.mxu0 %v255_v26 }
 0x1b4   :  { %v309_v28 = vpop.f32.mrf.mxu3  ;;  %v329_v30 = vpop.f32.mrf.mxu0 }
 0x1b5   :  { %v310_v29 = vadd.f32 %v386_v27, %v309_v28 }
 0x1b7   :  { %v330_v31 = vadd.f32 %v329_v30, %v310_v29 }
 0x1b9   :  { %v332_v33 = vmax.f32 %v330_v31, 0.0 }
 0x1bb   :  { %v337_v34 = vmul.f32 %v387_v32, %v332_v33 }
 0x1bd   :  { %338 = vadd.xlane.f32.xlu0 %v337_v34 }
 0x230   :  { %v339_v36 = vpop.xlane.xlu0 %338 }
 0x231   :  { %v342_v37 = vadd.f32 %v341_v35, %v339_v36 }
 0x233   :  { %v374_v38 = vmul.f32 -1.442695, %v342_v37 }
 0x235   :  { %388 = vpow2.f32 %v374_v38 }
 0x23b   :  { %v389_v39 = vpop.eup %388 }
 0x23c   :  { %v346_v40 = vadd.f32 1.0, %v389_v39 }
 0x23e   :  { %390 = vrcp.f32 %v346_v40  ;;  %v358_v44 = vand.u32 2147483648, %v346_v40  ;;  %v356_v46 = vand.u32 2147483647, %v346_v40  ;;  %vm352_vm2 = vweird.f32 %v346_v40 }
 0x240   :  { %v359_v48 = vor.u32 1.1754944e-38, %v358_v44  ;;  %vm357_vm5 = vcmp.eq.f32.partialorder %v356_v46, 8.507059e+37 }
 0x244   :  { %v391_v41 = vpop.eup %390 }
 0x245   :  { %v348_v42 = vmul.f32 %v391_v41, %v346_v40  ;;  %vm353_vm1 = vweird.f32 %v391_v41 }
 0x246   :  { %vm354_vm3 = vmor %vm352_vm2, %vm353_vm1 }
 0x247   :  { %v349_v43 = vsub.f32 1.0, %v348_v42 }
 0x249   :  { %v350_v45 = vmul.f32 %v391_v41, %v349_v43 }
 0x24b   :  { %v351_v47 = vadd.f32 %v391_v41, %v350_v45 }
 0x24d   :  { %v355_v49 = vsel %vm354_vm3, %v391_v41, %v351_v47 }
 0x24e   :  { %v360_v50 = vsel %vm357_vm5, %v359_v48, %v355_v49 }
 0x24f   :  { %363 = vst.msk [vmem:[%s658_s12] sm:$0xff] %vm362_vm4, %v360_v50 }
 0x250   :  { %368 = vsyncpa [#allocation5], 1 }
 0x251   :  { %369 = vsyncpa [#allocation9], 1 }
 0x252   :  { %370 = vsyncpa [#allocation12], 1 }
 0x253   :  { %371 = vsyncpa [#allocation6], 1 }

</bundles_post_ra>
